<compile_context>
chip_gen: v7x
topology: tpu7x:2x2x1
jax: 0.10.0
libtpu: 0.0.40
codegen_flags: <defaults>
</compile_context>

<pallas_src>
import functools

import jax
import jax.numpy as jnp
from jax.experimental import pallas as pl
from jax.experimental.pallas import tpu as pltpu

SUBLANE = 8  # batch tiles must be multiples of the vreg sublane count


def _round_up(x, m):
    return ((x + m - 1) // m) * m


def _make_kernel(compute_dtype):
    def adapter_head_kernel(x_ref, wd_ref, bd_ref, wu_ref, bu_ref, o_ref):
        x = x_ref[...]
        if compute_dtype is not None:
            # Cast MXU operands in-kernel (no extra wrapper-side HBM pass).
            x = x.astype(compute_dtype)
        # down: (tile, in) @ (in, bneck), f32 accumulation on the MXU
        h = jnp.dot(x, wd_ref[...], preferred_element_type=jnp.float32)
        h = jnp.maximum(h + bd_ref[...], 0.0)          # f32 bias + ReLU epilogue
        # up: (tile, bneck) @ (bneck, classes)
        out = jnp.dot(h.astype(wu_ref.dtype), wu_ref[...],
                      preferred_element_type=jnp.float32)
        o_ref[...] = (out + bu_ref[...]).astype(o_ref.dtype)

    return adapter_head_kernel


def prepare_params(w_down, b_down, w_up, b_up, *, compute_dtype=None):
    """One-time prep: (in, out)-layout weights, optional bf16 cast of the MXU
    operands; biases stay f32 for the epilogue.  Call once, reuse per step."""
    wd = w_down if compute_dtype is None else w_down.astype(compute_dtype)
    wu = w_up if compute_dtype is None else w_up.astype(compute_dtype)
    bd = b_down.reshape(1, -1).astype(jnp.float32)
    bu = b_up.reshape(1, -1).astype(jnp.float32)
    return wd, bd, wu, bu


@functools.partial(jax.jit, static_argnames=("tile_b", "compute_dtype",
                                             "vmem_limit_bytes"))
def adapter_head(x, wd, bd, wu, bu, *, tile_b=2048, compute_dtype=None,
                 vmem_limit_bytes=32 * 1024 * 1024):
    """x: (B, in_features); wd: (in, bneck); wu: (bneck, classes).

    tile_b: batch tile.  Pick it so the grid has several steps when B is
    large (pipelining + megacore); 1024-4096 is a good range on all of
    v5e/v6e/v7x — VMEM use stays in the single-digit MiB range.
    compute_dtype: e.g. jnp.bfloat16 for narrow MXU operands (pair with
    prepare_params(compute_dtype=...)); accumulation stays f32.
    """
    B, in_features = x.shape
    bneck = wd.shape[1]
    num_classes = wu.shape[1]
    out_dtype = x.dtype

    # Batch tile: multiple of the sublane count, no padding of x itself.
    eff_tile = min(tile_b, _round_up(B, SUBLANE))
    eff_tile = max(SUBLANE, _round_up(eff_tile, SUBLANE))
    grid = (pl.cdiv(B, eff_tile),)

    # Advisory cost from true (unpadded) dims.
    flops = 2 * B * (in_features * bneck + bneck * num_classes)
    bytes_accessed = (x.size * x.dtype.itemsize
                      + wd.size * wd.dtype.itemsize
                      + bd.size * bd.dtype.itemsize
                      + wu.size * wu.dtype.itemsize
                      + bu.size * bu.dtype.itemsize
                      + B * num_classes * jnp.dtype(out_dtype).itemsize)

    return pl.pallas_call(
        _make_kernel(compute_dtype),
        out_shape=jax.ShapeDtypeStruct((B, num_classes), out_dtype),
        grid=grid,
        in_specs=[
            # x: tiled over the batch grid axis (partial last block is masked).
            pl.BlockSpec((eff_tile, in_features), lambda i: (i, 0)),
            # Weights / biases: constant block index -> VMEM-resident, no
            # per-step DMA.  Last dims equal the full array dims, so the
            # (8,128) divisibility rule is satisfied without padding.
            pl.BlockSpec((in_features, bneck), lambda i: (0, 0)),
            pl.BlockSpec((1, bneck), lambda i: (0, 0)),
            pl.BlockSpec((bneck, num_classes), lambda i: (0, 0)),
            pl.BlockSpec((1, num_classes), lambda i: (0, 0)),
        ],
        # Output written at its true width (no 128-lane slab, no wrapper slice).
        out_specs=pl.BlockSpec((eff_tile, num_classes), lambda i: (i, 0)),
        compiler_params=pltpu.CompilerParams(
            dimension_semantics=("parallel",),
            vmem_limit_bytes=vmem_limit_bytes),
        cost_estimate=pl.CostEstimate(
            flops=flops, transcendentals=0, bytes_accessed=bytes_accessed),
    )(x, wd, bd, wu, bu)


def init_params(key, in_features=128, num_classes=10, bottleneck=32,
                dtype=jnp.float32):
    """Deterministic init mirroring nn.Linear's uniform(-1/sqrt(fan_in)).
    Weights stored pre-transposed as (in, out) for the kernel."""
    k1, k2, k3, k4 = jax.random.split(key, 4)
    bound_d = 1.0 / (in_features ** 0.5)
    bound_u = 1.0 / (bottleneck ** 0.5)
    w_down = jax.random.uniform(k1, (in_features, bottleneck), dtype,
                                minval=-bound_d, maxval=bound_d)
    b_down = jax.random.uniform(k2, (1, bottleneck), dtype,
                                minval=-bound_d, maxval=bound_d)
    w_up = jax.random.uniform(k3, (bottleneck, num_classes), dtype,
                              minval=-bound_u, maxval=bound_u)
    b_up = jax.random.uniform(k4, (1, num_classes), dtype,
                              minval=-bound_u, maxval=bound_u)
    return w_down, b_down, w_up, b_up


if __name__ == "__main__":
    in_features, num_classes, bottleneck = 128, 10, 32

    key = jax.random.PRNGKey(0)
    k_x, k_p = jax.random.split(key)
    w_down, b_down, w_up, b_up = init_params(
        k_p, in_features, num_classes, bottleneck)

    # ---- f32 path, small batch (typical module usage) --------------------
    wd, bd, wu, bu = prepare_params(w_down, b_down, w_up, b_up)
    x_small = jax.random.normal(k_x, (8, in_features), jnp.float32)
    out_small = jax.block_until_ready(adapter_head(x_small, wd, bd, wu, bu))
    ref_small = jnp.maximum(x_small @ w_down + b_down, 0.0) @ w_up + b_up
    assert out_small.shape == (8, num_classes)
    assert jnp.allclose(out_small, ref_small, atol=1e-5, rtol=1e-5)

    # ---- f32 path, ragged batch: exercises the cdiv grid + masked last
    # block + megacore-parallel batch axis (small tile forces several steps).
    x_big = jax.random.normal(k_x, (515, in_features), jnp.float32)
    out_big = jax.block_until_ready(
        adapter_head(x_big, wd, bd, wu, bu, tile_b=128))
    ref_big = jnp.maximum(x_big @ w_down + b_down, 0.0) @ w_up + b_up
    assert out_big.shape == (515, num_classes)
    assert jnp.allclose(out_big, ref_big, atol=1e-5, rtol=1e-5)

    # ---- bf16 MXU-operand path (weights cast once, x cast in-kernel) -----
    wd16, bd16, wu16, bu16 = prepare_params(
        w_down, b_down, w_up, b_up, compute_dtype=jnp.bfloat16)
    out_bf16 = jax.block_until_ready(
        adapter_head(x_big, wd16, bd16, wu16, bu16, tile_b=128,
                     compute_dtype=jnp.bfloat16))
    assert out_bf16.shape == (515, num_classes)
    assert jnp.allclose(out_bf16, ref_big, atol=5e-2, rtol=5e-2)

    print("KERNEL_OK")
</pallas_src>

<mosaic_0001>
module attributes {stable_mosaic.version = 11 : i64} {
  func.func @adapter_head_kernel(%arg0: i32, %arg1: memref<8x128xf32, #tpu.memory_space<vmem>>, %arg2: memref<128x32xf32, #tpu.memory_space<vmem>>, %arg3: memref<1x32xf32, #tpu.memory_space<vmem>>, %arg4: memref<32x10xf32, #tpu.memory_space<vmem>>, %arg5: memref<1x10xf32, #tpu.memory_space<vmem>>, %arg6: memref<8x10xf32, #tpu.memory_space<vmem>>) attributes {dimension_semantics = [#tpu.dimension_semantics<parallel>], iteration_bounds = array<i64: 1>, scalar_prefetch = 0 : i64, scratch_operands = 0 : i64, tpu.core_type = #tpu.core_type<tc>, window_params = [{transform_indices = @transform_0, window_bounds = array<i64: 8, 128>}, {pipeline_mode = #tpu.pipeline_mode<synchronous>, transform_indices = @transform_1, window_bounds = array<i64: 128, 32>}, {pipeline_mode = #tpu.pipeline_mode<synchronous>, transform_indices = @transform_2, window_bounds = array<i64: 1, 32>}, {pipeline_mode = #tpu.pipeline_mode<synchronous>, transform_indices = @transform_3, window_bounds = array<i64: 32, 10>}, {pipeline_mode = #tpu.pipeline_mode<synchronous>, transform_indices = @transform_4, window_bounds = array<i64: 1, 10>}, {transform_indices = @transform_5, window_bounds = array<i64: 8, 10>}]} {
    %c0 = arith.constant 0 : index
    %c0_0 = arith.constant 0 : index
    %0 = vector.load %arg1[%c0, %c0_0] : memref<8x128xf32, #tpu.memory_space<vmem>>, vector<8x128xf32>
    %c0_1 = arith.constant 0 : index
    %c0_2 = arith.constant 0 : index
    %1 = vector.load %arg2[%c0_1, %c0_2] : memref<128x32xf32, #tpu.memory_space<vmem>>, vector<128x32xf32>
    %cst = arith.constant dense<0.000000e+00> : vector<8x32xf32>
    %2 = tpu.matmul %0, %1, %cst {dimension_numbers = #tpu.dot_dimension_numbers<[1], [0], [0], [1], [0, 0, 1, 1], [], []>} : vector<8x128xf32>, vector<128x32xf32>, vector<8x32xf32> -> vector<8x32xf32>
    %c0_3 = arith.constant 0 : index
    %c0_4 = arith.constant 0 : index
    %3 = vector.load %arg3[%c0_3, %c0_4] : memref<1x32xf32, #tpu.memory_space<vmem>>, vector<1x32xf32>
    %4 = vector.broadcast %3 : vector<1x32xf32> to vector<8x32xf32>
    %5 = arith.addf %2, %4 : vector<8x32xf32>
    %cst_5 = arith.constant 0.000000e+00 : f32
    %6 = vector.broadcast %cst_5 : f32 to vector<8x32xf32>
    %7 = arith.maximumf %5, %6 : vector<8x32xf32>
    %c0_6 = arith.constant 0 : index
    %c0_7 = arith.constant 0 : index
    %8 = vector.load %arg4[%c0_6, %c0_7] : memref<32x10xf32, #tpu.memory_space<vmem>>, vector<32x10xf32>
    %cst_8 = arith.constant dense<0.000000e+00> : vector<8x10xf32>
    %9 = tpu.matmul %7, %8, %cst_8 {dimension_numbers = #tpu.dot_dimension_numbers<[1], [0], [0], [1], [0, 0, 1, 1], [], []>} : vector<8x32xf32>, vector<32x10xf32>, vector<8x10xf32> -> vector<8x10xf32>
    %c0_9 = arith.constant 0 : index
    %c0_10 = arith.constant 0 : index
    %10 = vector.load %arg5[%c0_9, %c0_10] : memref<1x10xf32, #tpu.memory_space<vmem>>, vector<1x10xf32>
    %11 = vector.broadcast %10 : vector<1x10xf32> to vector<8x10xf32>
    %12 = arith.addf %9, %11 : vector<8x10xf32>
    %c0_11 = arith.constant 0 : index
    %c0_12 = arith.constant 0 : index
    %13 = vector.load %arg6[%c0_11, %c0_12] : memref<8x10xf32, #tpu.memory_space<vmem>>, vector<8x10xf32>
    tpu.vector_store %arg6[%c0_11, %c0_12], %12 {strides = array<i32>} : memref<8x10xf32, #tpu.memory_space<vmem>>, vector<8x10xf32>,
    return
  }
  func.func @transform_0(%arg0: i32) -> (i32, i32) {
    %c0_i32 = arith.constant 0 : i32
    %c0_i32_0 = arith.constant 0 : i32
    return %arg0, %c0_i32 : i32, i32
  }
  func.func @transform_1(%arg0: i32) -> (i32, i32) {
    %c0_i32 = arith.constant 0 : i32
    %c0_i32_0 = arith.constant 0 : i32
    %c0_i32_1 = arith.constant 0 : i32
    return %c0_i32, %c0_i32_0 : i32, i32
  }
  func.func @transform_2(%arg0: i32) -> (i32, i32) {
    %c0_i32 = arith.constant 0 : i32
    %c0_i32_0 = arith.constant 0 : i32
    %c0_i32_1 = arith.constant 0 : i32
    return %c0_i32, %c0_i32_0 : i32, i32
  }
  func.func @transform_3(%arg0: i32) -> (i32, i32) {
    %c0_i32 = arith.constant 0 : i32
    %c0_i32_0 = arith.constant 0 : i32
    %c0_i32_1 = arith.constant 0 : i32
    return %c0_i32, %c0_i32_0 : i32, i32
  }
  func.func @transform_4(%arg0: i32) -> (i32, i32) {
    %c0_i32 = arith.constant 0 : i32
    %c0_i32_0 = arith.constant 0 : i32
    %c0_i32_1 = arith.constant 0 : i32
    return %c0_i32, %c0_i32_0 : i32, i32
  }
  func.func @transform_5(%arg0: i32) -> (i32, i32) {
    %c0_i32 = arith.constant 0 : i32
    %c0_i32_0 = arith.constant 0 : i32
    return %arg0, %c0_i32 : i32, i32
  }
}

</mosaic_0001>

<bundles_post_ra>
// kernel: adapter_head.1
= control target key start
LH: loop header
LB: loop body
LE: loop exit
PB: predicated region body
PF: predicated region fallthrough
CT: control target
= control target key end

     0   :  { %v346_v3 = vmov 0.0|0.0   ;;  %vm347_vm0 = vmmov 0   ;;  %v348_v6 = vmov 0.0   ;;  %s461_s0 = inlined_call_operand.vmem [shape: f32[8,128], index: 0, kind: input, shape index: {}]   ;;  %s462_s1 = inlined_call_operand.vmem [shape: f32[128,32], index: 1, kind: input, shape index: {}]   ;;  %s463_s2 = inlined_call_operand.vmem [shape: f32[1,32], index: 2, kind: input, shape index: {}]   ;;  %s464_s3 = inlined_call_operand.vmem [shape: f32[32,10], index: 3, kind: input, shape index: {}]   ;;  %s465_s4 = inlined_call_operand.vmem [shape: f32[1,10], index: 4, kind: input, shape index: {}]   ;;  %s466_s5 = inlined_call_operand.hbm [shape: f32[8,10], index: 5, kind: output, shape index: {}]  }
   0x1   :  { %v22_v0 = vld [vmem:[%s462_s1] sm:$0xff]  ;;  %v23_v1 = vld [vmem:[%s462_s1 + $0x8] sm:$0xff]  ;;  %v24_v2 = vld [vmem:[%s462_s1 + $0x10] sm:$0xff]  ;;  %288 = vmatprep.subr.bf16.mxu0 %v346_v3  ;;  %274 = vmatprep.mubr.msk.f32.mxu0 %vm347_vm0, %v348_v6 }
   0x2   :  { %v289_v4 = vpack.c.bf16 %v23_v1, %v22_v0  ;;  %v25_v5 = vld [vmem:[%s462_s1 + $0x18] sm:$0xff]  ;;  %312 = vmatprep.subr.bf16.mxu1 %v346_v3  ;;  %285 = vmatprep.mubr.msk.f32.mxu1 %vm347_vm0, %v348_v6  ;;  %v26_v8 = vld [vmem:[%s462_s1 + $0x20] sm:$0xff]  ;;  %v27_v9 = vld [vmem:[%s462_s1 + $0x28] sm:$0xff] }
   0x3   :  { %v292_v7 = vpack.c.bf16 %v25_v5, %v24_v2  ;;  %v116_v10 = vld [vmem:[%s464_s3] sm:$0xff]  ;;  %v117_v11 = vld [vmem:[%s464_s3 + $0x8] sm:$0xff] }
   0x4   :  { %290 = vmatpush3.bf16.msra.mxu0 %v289_v4 }
   0x5   :  { %291 = vmatprep.subr.bf16.mxu0 %v346_v3 }
   0x6   :  { %10 = vsyncpa [#allocation3], 0  ;;  %v295_v12 = vpack.c.bf16 %v27_v9, %v26_v8  ;;  %v313_v13 = vpack.c.bf16 %v117_v11, %v116_v10  ;;  %v28_v14 = vld [vmem:[%s462_s1 + $0x30] sm:$0xff]  ;;  %v29_v15 = vld [vmem:[%s462_s1 + $0x38] sm:$0xff]  ;;  %vm127_vm1 = vcmask 261120   ;;  %s349_s12 = smov [#allocation2]  }
   0x7   :  { %v298_v16 = vpack.c.bf16 %v29_v15, %v28_v14  ;;  %v30_v17 = vld [vmem:[%s462_s1 + $0x40] sm:$0xff]  ;;  %v31_v18 = vld [vmem:[%s462_s1 + $0x48] sm:$0xff]  ;;  %v32_v20 = vld [vmem:[%s462_s1 + $0x50] sm:$0xff]  ;;  %s209_s13 = sshll.u32 %s349_s12, 4  ;;  %vm201_vm2 = vcmask 80896   ;;  %s210_s13 = int_to_ptr.vmem [resolvable:$true] %s209_s13 }
   0x8   :  { %293 = vmatpush3.bf16.msra.mxu0 %v292_v7  ;;  %314 = vmatpush3.bf16.msra.mxu1 %v313_v13  ;;  %v301_v19 = vpack.c.bf16 %v31_v18, %v30_v17  ;;  %v33_v21 = vld [vmem:[%s462_s1 + $0x58] sm:$0xff]  ;;  %v34_v23 = vld [vmem:[%s462_s1 + $0x60] sm:$0xff]  ;;  %v35_v24 = vld [vmem:[%s462_s1 + $0x68] sm:$0xff]  ;;  %p327_p1 = scmp.lt.s32.totalorder %s210_s13, %s210_s13 }
   0x9   :  { %294 = vmatprep.subr.bf16.mxu0 %v346_v3  ;;  %315 = vmatprep.subr.bf16.mxu1 %v346_v3  ;;  %v304_v22 = vpack.c.bf16 %v33_v21, %v32_v20  ;;  %v307_v25 = vpack.c.bf16 %v35_v24, %v34_v23  ;;  %v36_v26 = vld [vmem:[%s462_s1 + $0x70] sm:$0xff]  ;;  %v37_v27 = vld [vmem:[%s462_s1 + $0x78] sm:$0xff]  ;;  %v21_v29 = vld [vmem:[%s461_s0] sm:$0xff] }
   0xa   :  { %v310_v28 = vpack.c.bf16 %v37_v27, %v36_v26  ;;  %v118_v30 = vld [vmem:[%s464_s3 + $0x10] sm:$0xff]  ;;  %v119_v31 = vld [vmem:[%s464_s3 + $0x18] sm:$0xff]  ;;  %v217_v33 = vld [vmem:[%s463_s2] ss:$0 sm:$0xff]  ;;  %s322_s3 = scalar_lea.vmem %s210_s13, 128 }
   0xb   :  { %v316_v32 = vpack.c.bf16 %v119_v31, %v118_v30  ;;  %v218_v38 = vld [vmem:[%s465_s4] ss:$0 sm:$0xff]  ;;  %p323_p0 = scmp.ne.s32.totalorder %s210_s13, %s322_s3  ;;  %p328_p2 = scmp.lt.s32.totalorder %s322_s3, %s322_s3 }
   0xc   :  { %296 = vmatpush3.bf16.msra.mxu0 %v295_v12 }
   0xd   :  { %297 = vmatprep.subr.bf16.mxu0 %v346_v3  ;;  %317 = vmatpush3.bf16.msra.mxu1 %v316_v32  ;;  %p329_p3 = por %p328_p2, %p327_p1 }
   0xf   :  { %p330_p4 = pnand %p329_p3, %p323_p0 }
  0x10   :  { %299 = vmatpush3.bf16.msra.mxu0 %v298_v16 }
  0x11   :  { %300 = vmatprep.subr.bf16.mxu0 %v346_v3 }
  0x14   :  { %302 = vmatpush3.bf16.msra.mxu0 %v301_v19 }
  0x15   :  { %303 = vmatprep.subr.bf16.mxu0 %v346_v3 }
  0x18   :  { %305 = vmatpush3.bf16.msra.mxu0 %v304_v22 }
  0x19   :  { %306 = vmatprep.subr.bf16.mxu0 %v346_v3 }
  0x1c   :  { %308 = vmatpush3.bf16.msra.mxu0 %v307_v25 }
  0x1d   :  { %309 = vmatprep.subr.bf16.mxu0 %v346_v3 }
  0x20   :  { %311 = vmatpush3.bf16.msra.mxu0 %v310_v28 }
  0x23   :  { %275 = vmatmul.mubr.f32.vlgmr.msra.gmra.mrb[0].mxu0 %v21_v29 }
  0xf6   :  { %v111_v34 = vpop.f32.mrb[0].mxu0 }
  0xf7   :  { %v112_v35 = vadd.f32 %v217_v33, %v111_v34  ;;  %v276_v36 = vpop.f32.mrb[1].mxu0 }
  0xf9   :  { %v115_v37 = vmax.f32 %v112_v35, 0.0 }
  0xfb   :  { %286 = vmatmul.mubr.msk.f32.vlgmr.msra.gmra.mrb[0].mxu1 %vm127_vm1, %v115_v37 }
 0x1ce   :  { %v197_v39 = vpop.f32.mrb[0].mxu1 }
 0x1cf   :  { %v198_v40 = vadd.f32 %v218_v38, %v197_v39  ;;  %v287_v41 = vpop.f32.mrb[1].mxu1 }
 0x1d1   :  { %202 = vst.msk [vmem:[#allocation2] sm:$0xff] %vm201_vm2, %v198_v40 }
 0x1d2   :  { %333 = shalt.err (!%p330_p4)
}
 0x1d3   :  { %s334_s15 = scalar_lea.hbm %s466_s5, 128 }
 0x1d4   :  { %p335_p5 = scmp.ne.s32.totalorder %s466_s5, %s334_s15  ;;  %p338_p6 = scmp.lt.u32.totalorder %s334_s15, %s466_s5 }
 0x1d6   :  { %p340_p7 = pnand %p338_p6, %p335_p5 }
 0x1d8   :  { %343 = shalt.err (!%p340_p7)
}
 0x1d9   :  { %212 = dma.vmem_to_hbm [thread:$0]  %s210_s13, 128, %s466_s5, [#allocation3]  }
 0x1da   :  { %344 = dma.done.wait [#allocation3], 128  }
 0x1db   :  { %345 = vsyncadd [#allocation3], 4294967168 }
 0x1dc   :  { %216 = vsyncpa [#allocation3], 1 }

</bundles_post_ra>
